<compile_context>
chip_gen: v5e
topology: v5e:2x2
jax: 0.10.0
libtpu: 0.0.40
codegen_flags: <defaults>
</compile_context>

<pallas_src>
import functools

import jax
import jax.numpy as jnp
import numpy as np
from jax.experimental import pallas as pl
from jax.experimental.pallas import tpu as pltpu

BP = 8        # padded batch (sublane tile; one f32 vreg per 128 lanes)
FP = 128      # padded feature (lane tile)
KC = 32       # contraction width fed to every matmul (all live rows are < 32)
HID = 8       # hiddenDim
MEM = 8       # memory_size (LSTM hidden)
H2 = HID // 2

# --- lane layout of the packed state/output tile ---------------------------
H_OFF = 0     # h_new  @ lanes 0:8   (also where the LSTM reads h)
C_OFF = 8     # c_new  @ lanes 8:16  (also where the LSTM reads c)
Z_OFF = 16    # z      @ lanes 16:24 (rep_Mod output cols == LSTM z rows;
              #                       state tile is ZERO here by construction)
A_OFF = 32    # action @ lane 32
V_OFF = 33    # value  @ lane 33
P_OFF = 34    # message probs @ lanes 34:34+vocab

# LSTM gate output columns (o aligned with h block, f aligned with c block)
O_COL, F_COL, I_COL, G_COL = 0, 8, 16, 24
# heads layer-1 intermediate columns (must stay inside the K=32 window)
D1_COL, V1_COL = 8, 16

# slab indices in the stacked weight / bias buffers
W_FRONT1, W_FRONT2, W_REP, W_LSTM, W_HEAD1, W_HEAD2 = range(6)


# ----------------------------------------------------------------------------
# Pallas kernel: the whole forward pass, 6 fused MXU matmuls, one output tile.
# ----------------------------------------------------------------------------
def _aria_kernel(x0_ref, hc_ref, w_ref, b_ref, out_ref, *, vocab):
    f32, bf16 = jnp.float32, jnp.bfloat16
    sig = jax.nn.sigmoid
    relu = lambda t: jnp.maximum(t, 0.0)
    lane = jax.lax.broadcasted_iota(jnp.int32, (BP, FP), 1)

    def lin(x, k):
        # K=32 LHS slice (lane offset 0), bf16 operands, f32 accumulate + bias.
        return (jnp.dot(x[:, :KC].astype(bf16), w_ref[k],
                        preferred_element_type=f32) + b_ref[k:k + 1, :])

    x0 = x0_ref[...]   # obs @ lanes 0:2, msg @ lanes 2:6
    hc = hc_ref[...]   # h @ 0:8, c @ 8:16, ZEROS @ 16:32 (rest ignored)

    # 1) obs_Mod + msg_Enc L1:  o @ 0:4, msg-hidden @ 4:8
    y1 = relu(lin(x0, W_FRONT1))
    # 2) msg_Enc L2 (+ identity pass of o):  [o | m] @ 0:8
    y2 = relu(lin(y1, W_FRONT2))
    # 3) rep_Mod:  z @ 16:24 (directly at the LSTM's z rows -> no roll, no mask)
    z = relu(lin(y2, W_REP))

    # 4) LSTMCell(8, 8): all gate GEMMs in one matmul.
    #    LHS lanes (within K=32): h @ 0:8, c @ 8:16 (zero weight rows), z @ 16:24
    xh = hc + z
    pre = lin(xh, W_LSTM)          # o@0:8, f@8:16, i@16:24, 2*g_pre@24:32
    s = sig(pre)                   # single EUP pass for all gates
    g_lanes = (lane >= G_COL) & (lane < G_COL + MEM)
    gate = jnp.where(g_lanes, 2.0 * s - 1.0, s)       # tanh(g) via sigmoid id.
    ig = gate * pltpu.roll(gate, FP - MEM, 1)         # i*g @ 16:24
    c_new = gate * hc + pltpu.roll(ig, FP - MEM, 1)   # f*c + i*g @ 8:16
    h_new = gate * pltpu.roll(jnp.tanh(c_new), FP - MEM, 1)   # o*tanh(c) @ 0:8

    # 5) heads L1: act-pre @ 32, dec1 @ 8:16, val1 @ 16:24 (h rows 0:8 only;
    #    junk lanes of h_new hit zero weight rows)
    y5 = relu(lin(h_new, W_HEAD1))
    # 6) heads L2: value-pre @ 33, msg logits @ 34:34+vocab
    y6 = lin(y5, W_HEAD2)

    # action = sigmoid(relu(Linear(h)))               -> lane 32
    act_part = jnp.where(lane == A_OFF, sig(y5), 0.0)
    # value  = relu(Linear(relu(Linear(h))))          -> lane 33
    val_part = jnp.where(lane == V_OFF, relu(y6), 0.0)
    # message = softmax(logits) over lanes 34:34+vocab
    valid = (lane >= P_OFF) & (lane < P_OFF + vocab)
    logits = jnp.where(valid, y6, -1e30)
    mx = jnp.max(logits, axis=-1, keepdims=True)
    e = jnp.exp(logits - mx)
    denom = jnp.sum(e, axis=-1, keepdims=True)
    r = pl.reciprocal(denom, approx=True)
    r = r * (2.0 - denom * r)      # one Newton step -> probs sum to 1 (f32 acc.)
    probs = e * r

    # h_new -> lanes 0:8, c_new -> lanes 8:16 (already in place, mask only)
    h_part = jnp.where(lane < H_OFF + MEM, h_new, 0.0)
    c_part = jnp.where((lane >= C_OFF) & (lane < C_OFF + MEM), c_new, 0.0)

    # lanes 16:32 stay exactly zero -> the tile is directly reusable as state.
    out_ref[...] = h_part + c_part + act_part + val_part + probs


# ----------------------------------------------------------------------------
# Parameter construction (deterministic, PyTorch-style uniform init).
# ----------------------------------------------------------------------------
def init_params(key, vocab):
    def linear(k, fan_in, fan_out):
        k1, k2 = jax.random.split(k)
        bound = 1.0 / np.sqrt(fan_in)
        W = jax.random.uniform(k1, (fan_out, fan_in), jnp.float32, -bound, bound)
        b = jax.random.uniform(k2, (fan_out,), jnp.float32, -bound, bound)
        return W, b

    keys = jax.random.split(key, 16)
    p = {}
    p["obs"] = linear(keys[0], 2, H2)
    p["msg1"] = linear(keys[1], 4, H2)
    p["msg2"] = linear(keys[2], H2, H2)
    p["rep"] = linear(keys[3], HID, HID)
    bound = 1.0 / np.sqrt(MEM)
    lk = jax.random.split(keys[4], 4)
    p["W_ih"] = jax.random.uniform(lk[0], (4 * MEM, HID), jnp.float32, -bound, bound)
    p["W_hh"] = jax.random.uniform(lk[1], (4 * MEM, MEM), jnp.float32, -bound, bound)
    p["b_ih"] = jax.random.uniform(lk[2], (4 * MEM,), jnp.float32, -bound, bound)
    p["b_hh"] = jax.random.uniform(lk[3], (4 * MEM,), jnp.float32, -bound, bound)
    p["act"] = linear(keys[5], MEM, 1)
    p["dec1"] = linear(keys[6], MEM, MEM)
    p["dec2"] = linear(keys[7], MEM, vocab)
    p["val1"] = linear(keys[8], MEM, MEM)
    p["val2"] = linear(keys[9], MEM, 1)
    return p


# ----------------------------------------------------------------------------
# Pack all linears into one (6,32,128) bf16 weight stack + (8,128) f32 biases.
# Row/column placement matches the kernel layout documented above.
# ----------------------------------------------------------------------------
def pack_params(p, vocab):
    assert 1 <= vocab <= FP - P_OFF, "vocab must fit in output lanes 34:128"
    W = jnp.zeros((6, KC, FP), jnp.float32)
    b = jnp.zeros((8, FP), jnp.float32)

    def put_w(W, k, r0, c0, blk):
        blk = jnp.asarray(blk, jnp.float32)
        return W.at[k, r0:r0 + blk.shape[0], c0:c0 + blk.shape[1]].set(blk)

    def put_b(b, k, c0, vec):
        vec = jnp.asarray(vec, jnp.float32)
        return b.at[k, c0:c0 + vec.shape[0]].set(vec)

    # 0) front L1: obs_Mod (rows 0:2 -> cols 0:4), msg_Enc L1 (rows 2:6 -> cols 4:8)
    Wo, bo = p["obs"]
    Wm1, bm1 = p["msg1"]
    W = put_w(W, W_FRONT1, 0, 0, Wo.T);    b = put_b(b, W_FRONT1, 0, bo)
    W = put_w(W, W_FRONT1, 2, H2, Wm1.T);  b = put_b(b, W_FRONT1, H2, bm1)

    # 1) front L2: identity pass of o (rows/cols 0:4), msg_Enc L2 (rows/cols 4:8)
    Wm2, bm2 = p["msg2"]
    W = put_w(W, W_FRONT2, 0, 0, jnp.eye(H2, dtype=jnp.float32))
    W = put_w(W, W_FRONT2, H2, H2, Wm2.T); b = put_b(b, W_FRONT2, H2, bm2)

    # 2) rep_Mod (8->8): rows 0:8 -> cols 16:24 (= LSTM z rows)
    Wr, br = p["rep"]
    W = put_w(W, W_REP, 0, Z_OFF, Wr.T);   b = put_b(b, W_REP, Z_OFF, br)

    # 3) LSTM: W_hh^T at rows 0:8 (h lanes), W_ih^T at rows 16:24 (z lanes),
    #    c rows 8:16 stay zero. Torch gate order i,f,g,o -> our columns;
    #    g-gate weights/bias scaled by 2 for the 2*sigmoid(2x)-1 identity.
    gate_cols = {0: I_COL, 1: F_COL, 2: G_COL, 3: O_COL}
    gate_scale = {0: 1.0, 1: 1.0, 2: 2.0, 3: 1.0}
    bsum = p["b_ih"] + p["b_hh"]
    for t in range(4):
        c0, sc = gate_cols[t], gate_scale[t]
        W = put_w(W, W_LSTM, H_OFF, c0, sc * p["W_hh"][t * MEM:(t + 1) * MEM].T)
        W = put_w(W, W_LSTM, Z_OFF, c0, sc * p["W_ih"][t * MEM:(t + 1) * MEM].T)
        b = put_b(b, W_LSTM, c0, sc * bsum[t * MEM:(t + 1) * MEM])

    # 4) heads L1 (from h rows 0:8): action -> col 32, dec1 -> 8:16, val1 -> 16:24
    Wa, ba = p["act"]; Wd1, bd1 = p["dec1"]; Wv1, bv1 = p["val1"]
    W = put_w(W, W_HEAD1, 0, A_OFF, Wa.T);   b = put_b(b, W_HEAD1, A_OFF, ba)
    W = put_w(W, W_HEAD1, 0, D1_COL, Wd1.T); b = put_b(b, W_HEAD1, D1_COL, bd1)
    W = put_w(W, W_HEAD1, 0, V1_COL, Wv1.T); b = put_b(b, W_HEAD1, V1_COL, bv1)

    # 5) heads L2: dec2 rows 8:16 -> cols 34:34+vocab, val2 rows 16:24 -> col 33
    Wd2, bd2 = p["dec2"]; Wv2, bv2 = p["val2"]
    W = put_w(W, W_HEAD2, D1_COL, P_OFF, Wd2.T); b = put_b(b, W_HEAD2, P_OFF, bd2)
    W = put_w(W, W_HEAD2, V1_COL, V_OFF, Wv2.T); b = put_b(b, W_HEAD2, V_OFF, bv2)

    return W.astype(jnp.bfloat16), b


# ----------------------------------------------------------------------------
# Wrapper: single gridless pallas_call on packed (8,128) tiles. The output tile
# IS the next step's state tile (state layout is self-consistent).
# ----------------------------------------------------------------------------
@functools.partial(jax.jit, static_argnames=("vocab",))
def aria_step(x0_tile, state_tile, w_packed, b_packed, vocab):
    return pl.pallas_call(
        functools.partial(_aria_kernel, vocab=vocab),
        out_shape=jax.ShapeDtypeStruct((BP, FP), jnp.float32),
        input_output_aliases={1: 0},   # state tile buffer reused for the output
    )(x0_tile, state_tile, w_packed, b_packed)


def pack_inputs(obs, msg):
    B = obs.shape[0]
    return (jnp.zeros((BP, FP), jnp.float32)
            .at[:B, 0:2].set(obs)
            .at[:B, 2:6].set(msg))


def pack_memory(memory):
    # Only needed for an externally supplied [h|c]; thereafter the kernel's
    # packed output tile is passed back directly (lanes 16:32 are zero).
    B = memory.shape[0]
    return jnp.zeros((BP, FP), jnp.float32).at[:B, 0:2 * MEM].set(memory)


def unpack_outputs(out, B, vocab):
    action = out[:B, A_OFF:A_OFF + 1]
    value = out[:B, V_OFF:V_OFF + 1]
    message = out[:B, P_OFF:P_OFF + vocab]
    out_memory = out[:B, 0:2 * MEM]          # [h | c], already contiguous
    return action, message, out_memory, value


def aria_forward(obs, msg, memory, w_packed, b_packed, vocab):
    """Module-equivalent forward: (action, message, out_memory, value)."""
    out = aria_step(pack_inputs(obs, msg), pack_memory(memory),
                    w_packed, b_packed, vocab)
    return unpack_outputs(out, obs.shape[0], vocab)


# ----------------------------------------------------------------------------
# Pure-JAX reference (mirrors the PyTorch forward) for verification.
# ----------------------------------------------------------------------------
def aria_forward_ref(obs, msg, memory, p, vocab):
    relu = jax.nn.relu

    def lin(x, Wb):
        W, b = Wb
        return x @ W.T + b

    o = relu(lin(obs, p["obs"]))
    m = relu(lin(relu(lin(msg, p["msg1"])), p["msg2"]))
    z = relu(lin(jnp.concatenate([o, m], -1), p["rep"]))
    h, c = memory[:, :MEM], memory[:, MEM:]
    gates = z @ p["W_ih"].T + p["b_ih"] + h @ p["W_hh"].T + p["b_hh"]
    i_g, f_g, g_g, o_g = jnp.split(gates, 4, axis=-1)
    i_g, f_g, o_g = jax.nn.sigmoid(i_g), jax.nn.sigmoid(f_g), jax.nn.sigmoid(o_g)
    g_g = jnp.tanh(g_g)
    c_new = f_g * c + i_g * g_g
    h_new = o_g * jnp.tanh(c_new)
    action = jax.nn.sigmoid(relu(lin(h_new, p["act"])))
    message = jax.nn.softmax(lin(relu(lin(h_new, p["dec1"])), p["dec2"]), axis=-1)
    value = relu(lin(relu(lin(h_new, p["val1"])), p["val2"]))
    out_memory = jnp.concatenate([h_new, c_new], axis=1)
    return action, message, out_memory, value


if __name__ == "__main__":
    vocab = 10   # opt_params['vocab_size']
    B = 2        # small batch
    key = jax.random.PRNGKey(0)
    kp, ko1, km1, kmem, ko2, km2 = jax.random.split(key, 6)

    params = init_params(kp, vocab)
    w_packed, b_packed = pack_params(params, vocab)

    obs1 = jax.random.normal(ko1, (B, 2), jnp.float32)
    msg1 = jax.random.normal(km1, (B, 4), jnp.float32)
    memory0 = jax.random.normal(kmem, (B, 2 * MEM), jnp.float32)
    obs2 = jax.random.normal(ko2, (B, 2), jnp.float32)
    msg2 = jax.random.normal(km2, (B, 4), jnp.float32)

    # step 1: state tile built once from the external [h|c] memory
    out1 = aria_step(pack_inputs(obs1, msg1), pack_memory(memory0),
                     w_packed, b_packed, vocab)
    # step 2: previous packed output tile IS the next state (no repack glue)
    out2 = aria_step(pack_inputs(obs2, msg2), out1, w_packed, b_packed, vocab)
    jax.block_until_ready((out1, out2))

    a1, m1, mem1, v1 = unpack_outputs(out1, B, vocab)
    a2, m2, mem2, v2 = unpack_outputs(out2, B, vocab)

    ra1, rm1, rmem1, rv1 = aria_forward_ref(obs1, msg1, memory0, params, vocab)
    ra2, rm2, rmem2, rv2 = aria_forward_ref(obs2, msg2, rmem1, params, vocab)

    # bf16 MXU operands -> relaxed tolerance vs the f32 reference (two chained
    # steps compound the rounding slightly).
    tol = dict(atol=3e-2, rtol=3e-2)
    checks = [(a1, ra1), (m1, rm1), (mem1, rmem1), (v1, rv1),
              (a2, ra2), (m2, rm2), (mem2, rmem2), (v2, rv2)]
    for got, want in checks:
        assert np.allclose(np.asarray(got), np.asarray(want), **tol), (got, want)

    print("KERNEL_OK")
</pallas_src>

<mosaic_0001>
module attributes {stable_mosaic.version = 11 : i64} {
  func.func @_aria_kernel(%arg0: memref<8x128xf32, #tpu.memory_space<vmem>>, %arg1: memref<8x128xf32, #tpu.memory_space<vmem>>, %arg2: memref<6x32x128xbf16, #tpu.memory_space<vmem>>, %arg3: memref<8x128xf32, #tpu.memory_space<vmem>>, %arg4: memref<8x128xf32, #tpu.memory_space<vmem>>) attributes {dimension_semantics = [], scalar_prefetch = 0 : i64, scratch_operands = 0 : i64, tpu.core_type = #tpu.core_type<tc>} {
    %0 = tpu.iota {dimensions = array<i32: 1>} : vector<8x128xi32>
    %c0 = arith.constant 0 : index
    %c0_0 = arith.constant 0 : index
    %1 = vector.load %arg0[%c0, %c0_0] : memref<8x128xf32, #tpu.memory_space<vmem>>, vector<8x128xf32>
    %c0_1 = arith.constant 0 : index
    %c0_2 = arith.constant 0 : index
    %2 = vector.load %arg1[%c0_1, %c0_2] : memref<8x128xf32, #tpu.memory_space<vmem>>, vector<8x128xf32>
    %3 = vector.extract_strided_slice %1 {offsets = [0, 0], sizes = [8, 32], strides = [1, 1]} : vector<8x128xf32> to vector<8x32xf32>
    %4 = arith.truncf %3 : vector<8x32xf32> to vector<8x32xbf16>
    %c0_3 = arith.constant 0 : index
    %c0_4 = arith.constant 0 : index
    %c0_5 = arith.constant 0 : index
    %5 = vector.load %arg2[%c0_3, %c0_4, %c0_5] : memref<6x32x128xbf16, #tpu.memory_space<vmem>>, vector<1x32x128xbf16>
    %6 = vector.shape_cast %5 : vector<1x32x128xbf16> to vector<32x128xbf16>
    %cst = arith.constant dense<0.000000e+00> : vector<8x128xf32>
    %7 = tpu.matmul %4, %6, %cst {dimension_numbers = #tpu.dot_dimension_numbers<[1], [0], [0], [1], [0, 0, 1, 1], [], []>} : vector<8x32xbf16>, vector<32x128xbf16>, vector<8x128xf32> -> vector<8x128xf32>
    %c0_6 = arith.constant 0 : index
    %c0_7 = arith.constant 0 : index
    %8 = vector.load %arg3[%c0_6, %c0_7] : memref<8x128xf32, #tpu.memory_space<vmem>>, vector<1x128xf32>
    %9 = vector.broadcast %8 : vector<1x128xf32> to vector<8x128xf32>
    %10 = arith.addf %7, %9 : vector<8x128xf32>
    %cst_8 = arith.constant 0.000000e+00 : f32
    %11 = vector.broadcast %cst_8 : f32 to vector<8x128xf32>
    %12 = arith.maximumf %10, %11 : vector<8x128xf32>
    %13 = vector.extract_strided_slice %12 {offsets = [0, 0], sizes = [8, 32], strides = [1, 1]} : vector<8x128xf32> to vector<8x32xf32>
    %14 = arith.truncf %13 : vector<8x32xf32> to vector<8x32xbf16>
    %c1 = arith.constant 1 : index
    %c0_9 = arith.constant 0 : index
    %c0_10 = arith.constant 0 : index
    %15 = vector.load %arg2[%c1, %c0_9, %c0_10] : memref<6x32x128xbf16, #tpu.memory_space<vmem>>, vector<1x32x128xbf16>
    %16 = vector.shape_cast %15 : vector<1x32x128xbf16> to vector<32x128xbf16>
    %cst_11 = arith.constant dense<0.000000e+00> : vector<8x128xf32>
    %17 = tpu.matmul %14, %16, %cst_11 {dimension_numbers = #tpu.dot_dimension_numbers<[1], [0], [0], [1], [0, 0, 1, 1], [], []>} : vector<8x32xbf16>, vector<32x128xbf16>, vector<8x128xf32> -> vector<8x128xf32>
    %c1_12 = arith.constant 1 : index
    %c0_13 = arith.constant 0 : index
    %18 = vector.load %arg3[%c1_12, %c0_13] : memref<8x128xf32, #tpu.memory_space<vmem>>, vector<1x128xf32>
    %19 = vector.broadcast %18 : vector<1x128xf32> to vector<8x128xf32>
    %20 = arith.addf %17, %19 : vector<8x128xf32>
    %cst_14 = arith.constant 0.000000e+00 : f32
    %21 = vector.broadcast %cst_14 : f32 to vector<8x128xf32>
    %22 = arith.maximumf %20, %21 : vector<8x128xf32>
    %23 = vector.extract_strided_slice %22 {offsets = [0, 0], sizes = [8, 32], strides = [1, 1]} : vector<8x128xf32> to vector<8x32xf32>
    %24 = arith.truncf %23 : vector<8x32xf32> to vector<8x32xbf16>
    %c2 = arith.constant 2 : index
    %c0_15 = arith.constant 0 : index
    %c0_16 = arith.constant 0 : index
    %25 = vector.load %arg2[%c2, %c0_15, %c0_16] : memref<6x32x128xbf16, #tpu.memory_space<vmem>>, vector<1x32x128xbf16>
    %26 = vector.shape_cast %25 : vector<1x32x128xbf16> to vector<32x128xbf16>
    %cst_17 = arith.constant dense<0.000000e+00> : vector<8x128xf32>
    %27 = tpu.matmul %24, %26, %cst_17 {dimension_numbers = #tpu.dot_dimension_numbers<[1], [0], [0], [1], [0, 0, 1, 1], [], []>} : vector<8x32xbf16>, vector<32x128xbf16>, vector<8x128xf32> -> vector<8x128xf32>
    %c2_18 = arith.constant 2 : index
    %c0_19 = arith.constant 0 : index
    %28 = vector.load %arg3[%c2_18, %c0_19] : memref<8x128xf32, #tpu.memory_space<vmem>>, vector<1x128xf32>
    %29 = vector.broadcast %28 : vector<1x128xf32> to vector<8x128xf32>
    %30 = arith.addf %27, %29 : vector<8x128xf32>
    %cst_20 = arith.constant 0.000000e+00 : f32
    %31 = vector.broadcast %cst_20 : f32 to vector<8x128xf32>
    %32 = arith.maximumf %30, %31 : vector<8x128xf32>
    %33 = arith.addf %2, %32 : vector<8x128xf32>
    %34 = vector.extract_strided_slice %33 {offsets = [0, 0], sizes = [8, 32], strides = [1, 1]} : vector<8x128xf32> to vector<8x32xf32>
    %35 = arith.truncf %34 : vector<8x32xf32> to vector<8x32xbf16>
    %c3 = arith.constant 3 : index
    %c0_21 = arith.constant 0 : index
    %c0_22 = arith.constant 0 : index
    %36 = vector.load %arg2[%c3, %c0_21, %c0_22] : memref<6x32x128xbf16, #tpu.memory_space<vmem>>, vector<1x32x128xbf16>
    %37 = vector.shape_cast %36 : vector<1x32x128xbf16> to vector<32x128xbf16>
    %cst_23 = arith.constant dense<0.000000e+00> : vector<8x128xf32>
    %38 = tpu.matmul %35, %37, %cst_23 {dimension_numbers = #tpu.dot_dimension_numbers<[1], [0], [0], [1], [0, 0, 1, 1], [], []>} : vector<8x32xbf16>, vector<32x128xbf16>, vector<8x128xf32> -> vector<8x128xf32>
    %c3_24 = arith.constant 3 : index
    %c0_25 = arith.constant 0 : index
    %39 = vector.load %arg3[%c3_24, %c0_25] : memref<8x128xf32, #tpu.memory_space<vmem>>, vector<1x128xf32>
    %40 = vector.broadcast %39 : vector<1x128xf32> to vector<8x128xf32>
    %41 = arith.addf %38, %40 : vector<8x128xf32>
    %42 = arith.negf %41 : vector<8x128xf32>
    %43 = math.exp %42 : vector<8x128xf32>
    %cst_26 = arith.constant 1.000000e+00 : f32
    %44 = vector.broadcast %cst_26 : f32 to vector<8x128xf32>
    %45 = arith.addf %44, %43 : vector<8x128xf32>
    %46 = arith.divf %44, %45 : vector<8x128xf32>
    %c24_i32 = arith.constant 24 : i32
    %47 = vector.broadcast %c24_i32 : i32 to vector<8x128xi32>
    %48 = arith.cmpi sge, %0, %47 : vector<8x128xi32>
    %c32_i32 = arith.constant 32 : i32
    %49 = vector.broadcast %c32_i32 : i32 to vector<8x128xi32>
    %50 = arith.cmpi slt, %0, %49 : vector<8x128xi32>
    %51 = arith.andi %48, %50 : vector<8x128xi1>
    %cst_27 = arith.constant 2.000000e+00 : f32
    %52 = vector.broadcast %cst_27 : f32 to vector<8x128xf32>
    %53 = arith.mulf %52, %46 : vector<8x128xf32>
    %cst_28 = arith.constant 1.000000e+00 : f32
    %54 = vector.broadcast %cst_28 : f32 to vector<8x128xf32>
    %55 = arith.subf %53, %54 : vector<8x128xf32>
    %56 = arith.select %51, %55, %46 : vector<8x128xi1>, vector<8x128xf32>
    %c120_i32 = arith.constant 120 : i32
    %57 = tpu.dynamic_rotate %56 by %c120_i32 dim 1 : vector<8x128xf32>, i32 -> vector<8x128xf32>
    %58 = arith.mulf %56, %57 : vector<8x128xf32>
    %59 = arith.mulf %56, %2 : vector<8x128xf32>
    %c120_i32_29 = arith.constant 120 : i32
    %60 = tpu.dynamic_rotate %58 by %c120_i32_29 dim 1 : vector<8x128xf32>, i32 -> vector<8x128xf32>
    %61 = arith.addf %59, %60 : vector<8x128xf32>
    %62 = math.tanh %61 : vector<8x128xf32>
    %c120_i32_30 = arith.constant 120 : i32
    %63 = tpu.dynamic_rotate %62 by %c120_i32_30 dim 1 : vector<8x128xf32>, i32 -> vector<8x128xf32>
    %64 = arith.mulf %56, %63 : vector<8x128xf32>
    %65 = vector.extract_strided_slice %64 {offsets = [0, 0], sizes = [8, 32], strides = [1, 1]} : vector<8x128xf32> to vector<8x32xf32>
    %66 = arith.truncf %65 : vector<8x32xf32> to vector<8x32xbf16>
    %c4 = arith.constant 4 : index
    %c0_31 = arith.constant 0 : index
    %c0_32 = arith.constant 0 : index
    %67 = vector.load %arg2[%c4, %c0_31, %c0_32] : memref<6x32x128xbf16, #tpu.memory_space<vmem>>, vector<1x32x128xbf16>
    %68 = vector.shape_cast %67 : vector<1x32x128xbf16> to vector<32x128xbf16>
    %cst_33 = arith.constant dense<0.000000e+00> : vector<8x128xf32>
    %69 = tpu.matmul %66, %68, %cst_33 {dimension_numbers = #tpu.dot_dimension_numbers<[1], [0], [0], [1], [0, 0, 1, 1], [], []>} : vector<8x32xbf16>, vector<32x128xbf16>, vector<8x128xf32> -> vector<8x128xf32>
    %c4_34 = arith.constant 4 : index
    %c0_35 = arith.constant 0 : index
    %70 = vector.load %arg3[%c4_34, %c0_35] : memref<8x128xf32, #tpu.memory_space<vmem>>, vector<1x128xf32>
    %71 = vector.broadcast %70 : vector<1x128xf32> to vector<8x128xf32>
    %72 = arith.addf %69, %71 : vector<8x128xf32>
    %cst_36 = arith.constant 0.000000e+00 : f32
    %73 = vector.broadcast %cst_36 : f32 to vector<8x128xf32>
    %74 = arith.maximumf %72, %73 : vector<8x128xf32>
    %75 = vector.extract_strided_slice %74 {offsets = [0, 0], sizes = [8, 32], strides = [1, 1]} : vector<8x128xf32> to vector<8x32xf32>
    %76 = arith.truncf %75 : vector<8x32xf32> to vector<8x32xbf16>
    %c5 = arith.constant 5 : index
    %c0_37 = arith.constant 0 : index
    %c0_38 = arith.constant 0 : index
    %77 = vector.load %arg2[%c5, %c0_37, %c0_38] : memref<6x32x128xbf16, #tpu.memory_space<vmem>>, vector<1x32x128xbf16>
    %78 = vector.shape_cast %77 : vector<1x32x128xbf16> to vector<32x128xbf16>
    %cst_39 = arith.constant dense<0.000000e+00> : vector<8x128xf32>
    %79 = tpu.matmul %76, %78, %cst_39 {dimension_numbers = #tpu.dot_dimension_numbers<[1], [0], [0], [1], [0, 0, 1, 1], [], []>} : vector<8x32xbf16>, vector<32x128xbf16>, vector<8x128xf32> -> vector<8x128xf32>
    %c5_40 = arith.constant 5 : index
    %c0_41 = arith.constant 0 : index
    %80 = vector.load %arg3[%c5_40, %c0_41] : memref<8x128xf32, #tpu.memory_space<vmem>>, vector<1x128xf32>
    %81 = vector.broadcast %80 : vector<1x128xf32> to vector<8x128xf32>
    %82 = arith.addf %79, %81 : vector<8x128xf32>
    %c32_i32_42 = arith.constant 32 : i32
    %83 = vector.broadcast %c32_i32_42 : i32 to vector<8x128xi32>
    %84 = arith.cmpi eq, %0, %83 : vector<8x128xi32>
    %85 = arith.negf %74 : vector<8x128xf32>
    %86 = math.exp %85 : vector<8x128xf32>
    %cst_43 = arith.constant 1.000000e+00 : f32
    %87 = vector.broadcast %cst_43 : f32 to vector<8x128xf32>
    %88 = arith.addf %87, %86 : vector<8x128xf32>
    %89 = arith.divf %87, %88 : vector<8x128xf32>
    %cst_44 = arith.constant 0.000000e+00 : f32
    %90 = vector.broadcast %cst_44 : f32 to vector<8x128xf32>
    %91 = arith.select %84, %89, %90 : vector<8x128xi1>, vector<8x128xf32>
    %c33_i32 = arith.constant 33 : i32
    %92 = vector.broadcast %c33_i32 : i32 to vector<8x128xi32>
    %93 = arith.cmpi eq, %0, %92 : vector<8x128xi32>
    %cst_45 = arith.constant 0.000000e+00 : f32
    %94 = vector.broadcast %cst_45 : f32 to vector<8x128xf32>
    %95 = arith.maximumf %82, %94 : vector<8x128xf32>
    %cst_46 = arith.constant 0.000000e+00 : f32
    %96 = vector.broadcast %cst_46 : f32 to vector<8x128xf32>
    %97 = arith.select %93, %95, %96 : vector<8x128xi1>, vector<8x128xf32>
    %c34_i32 = arith.constant 34 : i32
    %98 = vector.broadcast %c34_i32 : i32 to vector<8x128xi32>
    %99 = arith.cmpi sge, %0, %98 : vector<8x128xi32>
    %c44_i32 = arith.constant 44 : i32
    %100 = vector.broadcast %c44_i32 : i32 to vector<8x128xi32>
    %101 = arith.cmpi slt, %0, %100 : vector<8x128xi32>
    %102 = arith.andi %99, %101 : vector<8x128xi1>
    %cst_47 = arith.constant -1.000000e+30 : f32
    %103 = vector.broadcast %cst_47 : f32 to vector<8x128xf32>
    %104 = arith.select %102, %82, %103 : vector<8x128xi1>, vector<8x128xf32>
    %cst_48 = arith.constant dense<0xFF800000> : vector<8xf32>
    %105 = vector.multi_reduction <maximumf>, %104, %cst_48 [1] : vector<8x128xf32> to vector<8xf32>
    %106 = vector.shape_cast %105 : vector<8xf32> to vector<8x1xf32>
    %107 = vector.broadcast %106 : vector<8x1xf32> to vector<8x128xf32>
    %108 = arith.subf %104, %107 : vector<8x128xf32>
    %109 = math.exp %108 : vector<8x128xf32>
    %cst_49 = arith.constant dense<0.000000e+00> : vector<8xf32>
    %110 = vector.multi_reduction <add>, %109, %cst_49 [1] : vector<8x128xf32> to vector<8xf32>
    %111 = vector.shape_cast %110 : vector<8xf32> to vector<8x1xf32>
    %112 = tpu.reciprocal %111 {approx = true} : vector<8x1xf32> -> vector<8x1xf32>
    %113 = arith.mulf %111, %112 : vector<8x1xf32>
    %cst_50 = arith.constant 2.000000e+00 : f32
    %114 = vector.broadcast %cst_50 : f32 to vector<8x1xf32>
    %115 = arith.subf %114, %113 : vector<8x1xf32>
    %116 = arith.mulf %112, %115 : vector<8x1xf32>
    %117 = vector.broadcast %116 : vector<8x1xf32> to vector<8x128xf32>
    %118 = arith.mulf %109, %117 : vector<8x128xf32>
    %c8_i32 = arith.constant 8 : i32
    %119 = vector.broadcast %c8_i32 : i32 to vector<8x128xi32>
    %120 = arith.cmpi slt, %0, %119 : vector<8x128xi32>
    %cst_51 = arith.constant 0.000000e+00 : f32
    %121 = vector.broadcast %cst_51 : f32 to vector<8x128xf32>
    %122 = arith.select %120, %64, %121 : vector<8x128xi1>, vector<8x128xf32>
    %c8_i32_52 = arith.constant 8 : i32
    %123 = vector.broadcast %c8_i32_52 : i32 to vector<8x128xi32>
    %124 = arith.cmpi sge, %0, %123 : vector<8x128xi32>
    %c16_i32 = arith.constant 16 : i32
    %125 = vector.broadcast %c16_i32 : i32 to vector<8x128xi32>
    %126 = arith.cmpi slt, %0, %125 : vector<8x128xi32>
    %127 = arith.andi %124, %126 : vector<8x128xi1>
    %cst_53 = arith.constant 0.000000e+00 : f32
    %128 = vector.broadcast %cst_53 : f32 to vector<8x128xf32>
    %129 = arith.select %127, %61, %128 : vector<8x128xi1>, vector<8x128xf32>
    %130 = arith.addf %122, %129 : vector<8x128xf32>
    %131 = arith.addf %130, %91 : vector<8x128xf32>
    %132 = arith.addf %131, %97 : vector<8x128xf32>
    %133 = arith.addf %132, %118 : vector<8x128xf32>
    %c0_54 = arith.constant 0 : index
    %c0_55 = arith.constant 0 : index
    %134 = vector.load %arg4[%c0_54, %c0_55] : memref<8x128xf32, #tpu.memory_space<vmem>>, vector<8x128xf32>
    tpu.vector_store %arg4[%c0_54, %c0_55], %133 {strides = array<i32>} : memref<8x128xf32, #tpu.memory_space<vmem>>, vector<8x128xf32>,
    return
  }
}

</mosaic_0001>

<bundles_post_ra>
// kernel: aria_step.1
= control target key start
LH: loop header
LB: loop body
LE: loop exit
PB: predicated region body
PF: predicated region fallthrough
CT: control target
= control target key end

     0   :  { %9 = vsyncpa [#allocation3], 0  ;;  %s630_s0 = inlined_call_operand.vmem [shape: f32[8,128], index: 0, kind: input, shape index: {}]   ;;  %s631_s1 = inlined_call_operand.hbm [shape: f32[8,128], index: 1, kind: input, shape index: {}, may-alias: {1,4}]   ;;  %s632_s2 = inlined_call_operand.hbm [shape: bf16[6,32,128], index: 2, kind: input, shape index: {}]   ;;  %s633_s3 = inlined_call_operand.vmem [shape: f32[8,128], index: 3, kind: input, shape index: {}]   ;;  %s634_s4 = inlined_call_operand.hbm [shape: f32[8,128], index: 4, kind: output, shape index: {}, may-alias: {1,4}]  }
   0x1   :  { %10 = vsyncpa [#allocation6], 0 }
   0x2   :  { %11 = vsyncpa [#allocation4], 0  ;;  %s19_s17 = sshll.u32 %s631_s1, 4  ;;  %s552_s18 = smov [#allocation2]   ;;  %s20_s17 = int_to_ptr.hbm [resolvable:$true] %s19_s17 }
   0x3   :  { %s21_s19 = sshll.u32 %s552_s18, 4  ;;  %s29_s22 = sshll.u32 %s632_s2, 4  ;;  %s22_s19 = int_to_ptr.vmem [resolvable:$true] %s21_s19  ;;  %s30_s22 = int_to_ptr.hbm [resolvable:$true] %s29_s22 }
   0x4   :  { %24 = dma.hbm_to_vmem [thread:$0]  %s20_s17, 128, %s22_s19, [#allocation3]  }
   0x5   :  { %s553_s23 = smov [#allocation5]   ;;  %s554_s25 = smov 64  }
   0x6   :  { %s31_s24 = sshll.u32 %s553_s23, 4  ;;  %s555_s26 = smov 4   ;;  %s32_s24 = int_to_ptr.vmem [resolvable:$true] %s31_s24 }
   0x7   :  { %37 = dma.hbm_to_vmem [thread:$0]  %s30_s22, 1536, %s32_s24, [#allocation6], %s554_s25, %s554_s25, %s555_s26  }
   0x8   :  { %546 = dma.done.wait [#allocation3], 128  }
   0x9   :  { %547 = vsyncadd [#allocation3], 4294967168 }
   0xa   :  { %548 = dma.done.wait [#allocation6], 1536  }
   0xb   :  { %549 = vsyncadd [#allocation6], 4294965760  ;;  %v437_v0 = vld [vmem:[#allocation5 + $0x8] sm:$0xff]  ;;  %v436_v1 = vld [vmem:[#allocation5] sm:$0xff]  ;;  %vm72_vm0 = vcmask 261120   ;;  %v49_v39 = vlaneseq  ;;  %s556_s8 = smov 120  }
   0xc   :  { %v51_v2 = vld [vmem:[%s630_s0] sm:$0xff]  ;;  %82 = vmatpush.bf16.msra.mxu0 %v437_v0  ;;  %v438_v5 = vld [vmem:[#allocation5 + $0x10] sm:$0xff]  ;;  %v441_v12 = vld [vmem:[#allocation5 + $0x28] sm:$0xff]  ;;  %s368_s16 = sshll.u32 %s634_s4, 4  ;;  %s369_s16 = int_to_ptr.hbm [resolvable:$true] %s368_s16 }
   0xd   :  { %v53_v3 = vpack.c.bf16 %v51_v2, %v51_v2  ;;  %v439_v4 = vld [vmem:[#allocation5 + $0x18] sm:$0xff]  ;;  %156 = vmatpush.bf16.msra.mxu2 %v441_v12  ;;  %v440_v13 = vld [vmem:[#allocation5 + $0x20] sm:$0xff]  ;;  %v442_v21 = vld [vmem:[#allocation5 + $0x30] sm:$0xff]  ;;  %v608_v42 = vand.u32 127, %v49_v39 }
   0xe   :  { %119 = vmatpush.bf16.msra.mxu1 %v439_v4  ;;  %v454_v6 = vld [vmem:[%s633_s3] ss:$0 sm:$0xff]  ;;  %v455_v14 = vld [vmem:[%s633_s3 + $0x1] ss:$0 sm:$0xff]  ;;  %v456_v22 = vld [vmem:[%s633_s3 + $0x2] ss:$0 sm:$0xff] }
   0xf   :  { %v443_v20 = vld [vmem:[#allocation5 + $0x38] sm:$0xff]  ;;  %vm220_vm5 = vcmp.ge.s32.totalorder %v608_v42, 24  ;;  %vm221_vm6 = vcmp.lt.s32.totalorder %v608_v42, 32  ;;  %v445_v54 = vld [vmem:[#allocation5 + $0x48] sm:$0xff]  ;;  %v444_v55 = vld [vmem:[#allocation5 + $0x40] sm:$0xff]  ;;  %vm352_vm8 = vcmp.ge.s32.totalorder %v608_v42, 8 }
  0x10   :  { %83 = vmatpush.bf16.msra.mxu0 %v436_v1  ;;  %194 = vmatpush.bf16.msra.mxu3 %v443_v20  ;;  %v52_v25 = vld [vmem:[#allocation2] sm:$0xff]  ;;  %vm222_vm7 = vmand %vm220_vm5, %vm221_vm6  ;;  %v446_v61 = vld [vmem:[#allocation5 + $0x50] sm:$0xff]  ;;  %vm353_vm9 = vcmp.lt.s32.totalorder %v608_v42, 16  ;;  %vm350_vm11 = vcmp.lt.s32.totalorder %v608_v42, 8  ;;  %vm310_vm14 = vcmp.eq.s32.totalorder %v608_v42, 32 }
  0x11   :  { %157 = vmatpush.bf16.msra.mxu2 %v440_v13  ;;  %v457_v30 = vld [vmem:[%s633_s3 + $0x3] ss:$0 sm:$0xff]  ;;  %vm354_vm10 = vmand %vm352_vm8, %vm353_vm9  ;;  %v458_v4 = vld [vmem:[%s633_s3 + $0x4] ss:$0 sm:$0xff] }
  0x12   :  { %120 = vmatpush.bf16.msra.mxu1 %v438_v5  ;;  %v447_v60 = vld [vmem:[#allocation5 + $0x58] sm:$0xff] }
  0x13   :  { %387 = vmatmul.msk.bf16.vlgmr.msra.gmra.mxu0 %vm72_vm0, %v53_v3 }
  0x14   :  { %195 = vmatpush.bf16.msra.mxu3 %v442_v21  ;;  %266 = vmatpush.bf16.msrb.mxu0 %v445_v54 }
  0x16   :  { %303 = vmatpush.bf16.msrb.mxu1 %v447_v60 }
  0x18   :  { %267 = vmatpush.bf16.msrb.mxu0 %v444_v55 }
  0x1a   :  { %304 = vmatpush.bf16.msrb.mxu1 %v446_v61 }
  0x90   :  { %v85_v7 = vpop.f32.mrf.mxu0 }
  0x91   :  { %v86_v8 = vadd.f32 %v454_v6, %v85_v7 }
  0x93   :  { %v89_v9 = vmax.f32 %v86_v8, 0.0 }
  0x95   :  { %v90_v10 = vpack.c.bf16 %v89_v9, %v89_v9 }
  0x97   :  { %396 = vmatmul.msk.bf16.vlgmr.msra.gmra.mxu1 %vm72_vm0, %v90_v10 }
  0x98   :  { %v87_v11 = vpop.f32.mrf.mxu0 }
 0x114   :  { %v122_v15 = vpop.f32.mrf.mxu1 }
 0x115   :  { %v123_v16 = vadd.f32 %v455_v14, %v122_v15 }
 0x117   :  { %v126_v17 = vmax.f32 %v123_v16, 0.0 }
 0x119   :  { %v127_v18 = vpack.c.bf16 %v126_v17, %v126_v17 }
 0x11b   :  { %405 = vmatmul.msk.bf16.vlgmr.msra.gmra.mxu2 %vm72_vm0, %v127_v18 }
 0x11c   :  { %v124_v19 = vpop.f32.mrf.mxu1 }
 0x19e   :  { %v159_v23 = vpop.f32.mrf.mxu2 }
 0x19f   :  { %v160_v24 = vadd.f32 %v456_v22, %v159_v23 }
 0x1a1   :  { %v163_v26 = vmax.f32 %v160_v24, 0.0 }
 0x1a3   :  { %v164_v27 = vadd.f32 %v163_v26, %v52_v25 }
 0x1a5   :  { %v165_v28 = vpack.c.bf16 %v164_v27, %v164_v27 }
 0x1a6   :  { %v161_v29 = vpop.f32.mrf.mxu2 }
 0x1a7   :  { %414 = vmatmul.msk.bf16.vlgmr.msra.gmra.mxu3 %vm72_vm0, %v165_v28 }
 0x22a   :  { %v197_v31 = vpop.f32.mrf.mxu3 }
 0x22b   :  { %v198_v32 = vadd.f32 %v457_v30, %v197_v31 }
 0x22d   :  { %v415_v33 = vmul.f32 -1.442695, %v198_v32 }
 0x22f   :  { %460 = vpow2.f32 %v415_v33 }
 0x232   :  { %v199_v34 = vpop.f32.mrf.mxu3 }
 0x235   :  { %v461_v35 = vpop.eup %460 }
 0x236   :  { %v204_v36 = vadd.f32 1.0, %v461_v35 }
 0x238   :  { %462 = vrcp.f32 %v204_v36  ;;  %v216_v41 = vand.u32 2147483648, %v204_v36  ;;  %v214_v44 = vand.u32 2147483647, %v204_v36  ;;  %vm210_vm2 = vweird.f32 %v204_v36 }
 0x23a   :  { %v217_v46 = vor.u32 1.1754944e-38, %v216_v41  ;;  %vm215_vm4 = vcmp.eq.f32.partialorder %v214_v44, 8.507059e+37 }
 0x23e   :  { %v463_v37 = vpop.eup %462 }
 0x23f   :  { %v206_v38 = vmul.f32 %v463_v37, %v204_v36  ;;  %vm211_vm1 = vweird.f32 %v463_v37 }
 0x240   :  { %vm212_vm3 = vmor %vm210_vm2, %vm211_vm1  ;;  %vm335_vm2 = vcmp.lt.s32.totalorder %v608_v42, 44 }
 0x241   :  { %v207_v40 = vsub.f32 1.0, %v206_v38 }
 0x243   :  { %v208_v43 = vmul.f32 %v463_v37, %v207_v40 }
 0x245   :  { %v209_v45 = vadd.f32 %v463_v37, %v208_v43 }
 0x247   :  { %v213_v47 = vsel %vm212_vm3, %v463_v37, %v209_v45 }
 0x248   :  { %v218_v48 = vsel %vm215_vm4, %v217_v46, %v213_v47  ;;  %vm331_vm4 = vcmp.eq.s32.totalorder %v608_v42, 33 }
 0x249   :  { %v223_v49 = vmul.f32 2.0, %v218_v48 }
 0x24b   :  { %v416_v50 = vadd.f32 -1.0, %v223_v49 }
 0x24d   :  { %v225_v51 = vsel %vm222_vm7, %v416_v50, %v218_v48 }
 0x24e   :  { %226 = vrot.lane.b32.xlu0 %v225_v51, %s556_s8  ;;  %v229_v56 = vmul.f32 %v225_v51, %v52_v25  ;;  %v459_v25 = vld [vmem:[%s633_s3 + $0x5] ss:$0 sm:$0xff]  ;;  %s557_s3 = smov [#allocation7]  }
 0x24f   :  { %s366_s13 = sshll.u32 %s557_s3, 4  ;;  %s367_s13 = int_to_ptr.vmem [resolvable:$true] %s366_s13 }
 0x2c0   :  { %v227_v52 = vpop.permute.xlu0 %226 }
 0x2c1   :  { %v228_v53 = vmul.f32 %v227_v52, %v225_v51 }
 0x2c3   :  { %230 = vrot.lane.b32.xlu0 %v228_v53, %s556_s8 }
 0x335   :  { %v231_v57 = vpop.permute.xlu0 %230 }
 0x336   :  { %v232_v58 = vadd.f32 %v231_v57, %v229_v56 }
 0x338   :  { %464 = vtanh.f32 %v232_v58  ;;  %v355_v0 = vsel %vm354_vm10, %v232_v58, 0.0 }
 0x33e   :  { %v465_v59 = vpop.eup %464 }
 0x33f   :  { %234 = vrot.lane.b32.xlu1 %v465_v59, %s556_s8 }
 0x3b1   :  { %v235_v62 = vpop.permute.xlu1 %234 }
 0x3b2   :  { %v236_v63 = vmul.f32 %v235_v62, %v225_v51 }
 0x3b4   :  { %v237_v1 = vpack.c.bf16 %v236_v63, %v236_v63  ;;  %v351_v2 = vsel %vm350_vm11, %v236_v63, 0.0 }
 0x3b5   :  { %v356_v3 = vadd.f32 %v355_v0, %v351_v2 }
 0x3b6   :  { %425 = vmatmul.msk.bf16.vlgmr.msrb.gmra.mxu0 %vm72_vm0, %v237_v1 }
 0x433   :  { %v269_v5 = vpop.f32.mrf.mxu0 }
 0x434   :  { %v270_v6 = vadd.f32 %v458_v4, %v269_v5 }
 0x436   :  { %v273_v7 = vmax.f32 %v270_v6, 0.0 }
 0x438   :  { %v274_v8 = vpack.c.bf16 %v273_v7, %v273_v7  ;;  %v435_v9 = vmul.f32 -1.442695, %v273_v7 }
 0x43a   :  { %466 = vpow2.f32 %v435_v9  ;;  %434 = vmatmul.msk.bf16.vlgmr.msrb.gmra.mxu1 %vm72_vm0, %v274_v8  ;;  %vm334_vm0 = vcmp.ge.s32.totalorder %v608_v42, 34 }
 0x43b   :  { %v271_v10 = vpop.f32.mrf.mxu0  ;;  %vm336_vm3 = vmand %vm334_vm0, %vm335_vm2 }
 0x440   :  { %v467_v11 = vpop.eup %466 }
 0x441   :  { %v314_v12 = vadd.f32 1.0, %v467_v11 }
 0x443   :  { %468 = vrcp.f32 %v314_v12  ;;  %v326_v16 = vand.u32 2147483648, %v314_v12  ;;  %v324_v18 = vand.u32 2147483647, %v314_v12  ;;  %vm320_vm13 = vweird.f32 %v314_v12 }
 0x445   :  { %v327_v20 = vor.u32 1.1754944e-38, %v326_v16  ;;  %vm325_vm1 = vcmp.eq.f32.partialorder %v324_v18, 8.507059e+37 }
 0x449   :  { %v469_v13 = vpop.eup %468 }
 0x44a   :  { %v316_v14 = vmul.f32 %v469_v13, %v314_v12  ;;  %vm321_vm12 = vweird.f32 %v469_v13 }
 0x44b   :  { %vm322_vm15 = vmor %vm320_vm13, %vm321_vm12 }
 0x44c   :  { %v317_v15 = vsub.f32 1.0, %v316_v14 }
 0x44e   :  { %v318_v17 = vmul.f32 %v469_v13, %v317_v15 }
 0x450   :  { %v319_v19 = vadd.f32 %v469_v13, %v318_v17 }
 0x452   :  { %v323_v21 = vsel %vm322_vm15, %v469_v13, %v319_v19 }
 0x453   :  { %v328_v22 = vsel %vm325_vm1, %v327_v20, %v323_v21 }
 0x454   :  { %v330_v23 = vsel %vm310_vm14, %v328_v22, 0.0 }
 0x455   :  { %v357_v24 = vadd.f32 %v356_v3, %v330_v23 }
 0x4b7   :  { %v306_v26 = vpop.f32.mrf.mxu1 }
 0x4b8   :  { %v307_v27 = vadd.f32 %v459_v25, %v306_v26 }
 0x4ba   :  { %v332_v28 = vmax.f32 %v307_v27, 0.0  ;;  %v337_v29 = vsel %vm336_vm3, %v307_v27, -1e+30 }
 0x4bb   :  { %338 = vmax.xlane.f32.xlu1 %v337_v29 }
 0x4bc   :  { %v333_v30 = vsel %vm331_vm4, %v332_v28, 0.0 }
 0x4bd   :  { %v358_v31 = vadd.f32 %v357_v24, %v333_v30 }
 0x4bf   :  { %v308_v32 = vpop.f32.mrf.mxu1 }
 0x52e   :  { %v339_v33 = vpop.xlane.xlu1 %338 }
 0x52f   :  { %v340_v34 = vsub.f32 %v337_v29, %v339_v33 }
 0x531   :  { %v341_v35 = vmul.f32 1.442695, %v340_v34 }
 0x533   :  { %470 = vpow2.f32 %v341_v35 }
 0x539   :  { %v471_v36 = vpop.eup %470 }
 0x53a   :  { %343 = vadd.xlane.f32.xlu2 %v471_v36 }
 0x5ad   :  { %v344_v37 = vpop.xlane.xlu2 %343 }
 0x5ae   :  { %472 = vrcp.f32 %v344_v37 }
 0x5b4   :  { %v473_v38 = vpop.eup %472 }
 0x5b5   :  { %v346_v39 = vmul.f32 %v473_v38, %v344_v37 }
 0x5b7   :  { %v347_v40 = vsub.f32 2.0, %v346_v39 }
 0x5b9   :  { %v348_v41 = vmul.f32 %v473_v38, %v347_v40 }
 0x5bb   :  { %v349_v42 = vmul.f32 %v471_v36, %v348_v41 }
 0x5bd   :  { %v359_v43 = vadd.f32 %v358_v31, %v349_v42 }
 0x5bf   :  { %360 = vst [vmem:[#allocation7] sm:$0xff] %v359_v43 }
 0x5c0   :  { %371 = dma.vmem_to_hbm [thread:$0]  %s367_s13, 128, %s369_s16, [#allocation4]  }
 0x5c1   :  { %550 = dma.done.wait [#allocation4], 128  }
 0x5c2   :  { %551 = vsyncadd [#allocation4], 4294967168 }
 0x5c3   :  { %376 = vsyncpa [#allocation3], 1 }
 0x5c4   :  { %377 = vsyncpa [#allocation6], 1 }
 0x5c5   :  { %378 = vsyncpa [#allocation4], 1 }

</bundles_post_ra>
